<compile_context>
chip_gen: v6e
topology: v6e:2x2x1
jax: 0.10.0
libtpu: 0.0.40
codegen_flags: <defaults>
</compile_context>

<pallas_src>
import functools

import jax
import jax.numpy as jnp
from jax import lax
from jax.experimental import pallas as pl
from jax.experimental.pallas import tpu as pltpu

K = 7
J = 0
ANGLE = (0.0, 30.0)
TRANS = (0.0, 0.45)
SHEAR = (0.0, 0.3)
SCALE = (1.0, 0.5)

_TP_MAX = 2048                               # max lanes per output-pixel tile
_VMEM_BUDGET = 20 * 1024 * 1024              # per-step working-set target (v7x-safe)
_PER_CHANNEL_TMP_BYTES = 4 * 1024 * 1024     # above this, use per-channel matmul


def _round_up(x, m):
    return ((x + m - 1) // m) * m


def _choose_tiling(B, C, H_in, W_in, P, img_itemsize):
    """Pick (TP, BB, per_channel, vmem_limit) against a per-generation-safe VMEM budget."""
    tp0 = min(_round_up(P, 128), _TP_MAX)
    tp_candidates = [tp0] + [t for t in (1024, 512, 256, 128) if t < tp0]
    TP = tp_candidates[-1]
    per_channel = False
    fixed = 0
    per_image = 0
    for tp in tp_candidates:
        per_channel = (C * H_in * tp * 4) > _PER_CHANNEL_TMP_BYTES
        tmp_bytes = (H_in if per_channel else C * H_in) * tp * 4          # matmul result
        weights = (H_in + W_in) * tp * 4                                   # Sy^T + Sx^T
        coords = 2 * 2 * tp * 4                                            # dbl-buffered coords
        fixed = tmp_bytes + weights + coords
        per_image = 2 * C * (H_in * W_in * img_itemsize + tp * 4)          # dbl-buffered img+out
        TP = tp
        if fixed + per_image <= _VMEM_BUDGET:
            break
    BB = 1
    for cand in range(min(B, 8), 0, -1):
        if B % cand == 0 and fixed + cand * per_image <= _VMEM_BUDGET:
            BB = cand
            break
    vmem_limit = int(min(max(2 * (fixed + BB * per_image), 32 * 1024 * 1024),
                         48 * 1024 * 1024))
    return TP, BB, per_channel, vmem_limit


# ---------------------------------------------------------------------------
# Pallas kernel: perspective warp with 'border' padding + bilinear sampling.
# ---------------------------------------------------------------------------
def _warp_kernel(minv_ref, coords_ref, img_ref, out_ref, *,
                 H_in, W_in, C, BB, TP, affine, per_channel, mm_dtype):
    """One (batch-block, pixel-tile) grid step: warp BB images, all C channels each.

    minv_ref   : SMEM (B*9,)                 row-major 3x3 matrices mapping dst pixel -> src pixel
    coords_ref : VMEM (1, 2, TP)             precomputed (xo, yo) destination coords for this tile
    img_ref    : VMEM (BB, C*H_in, W_in)     contiguous NCHW source (free reshape, no HBM transpose)
    out_ref    : VMEM (BB, C, TP)            lane-dense flattened output pixels for this tile
    """
    b = pl.program_id(0)

    coords = coords_ref[0]                   # (2, TP) f32, built in the wrapper (no int div here)
    xo = coords[0:1, :]                      # (1, TP)
    yo = coords[1:2, :]

    rows = lax.broadcasted_iota(jnp.int32, (H_in, TP), 0).astype(jnp.float32)
    cols = lax.broadcasted_iota(jnp.int32, (W_in, TP), 0).astype(jnp.float32)

    results = []
    for i in range(BB):                      # static unrolled; BB is small
        base = (b * BB + i) * 9
        m00 = minv_ref[base + 0]
        m01 = minv_ref[base + 1]
        m02 = minv_ref[base + 2]
        m10 = minv_ref[base + 3]
        m11 = minv_ref[base + 4]
        m12 = minv_ref[base + 5]

        xs = m00 * xo + m01 * yo + m02
        ys = m10 * xo + m11 * yo + m12
        if not affine:
            # General projective path (unused by AugmentModel: its matrices are affine).
            # No guard on denom ~ 0; approx reciprocal runs on the otherwise idle EUP slot.
            m20 = minv_ref[base + 6]
            m21 = minv_ref[base + 7]
            m22 = minv_ref[base + 8]
            inv_den = pl.reciprocal(m20 * xo + m21 * yo + m22, approx=True)
            xs = xs * inv_den
            ys = ys * inv_den

        # 'border' padding: clamp source coordinates into the valid pixel range.
        xs = jnp.clip(xs, 0.0, jnp.float32(W_in - 1))
        ys = jnp.clip(ys, 0.0, jnp.float32(H_in - 1))

        # Bilinear weights via the tent formula (equivalent to the one-hot interpolation
        # rows for clamped coords), built transposed so the pixel dim stays on lanes.
        sy_t = jnp.maximum(0.0, 1.0 - jnp.abs(rows - ys))      # (H_in, TP) f32
        sx_t = jnp.maximum(0.0, 1.0 - jnp.abs(cols - xs))      # (W_in, TP) f32
        sx_mm = sx_t.astype(mm_dtype)

        chans = []
        if per_channel:
            # Peak live intermediate is (H_in, TP) instead of (C*H_in, TP).
            for c in range(C):
                img_c = img_ref[i, c * H_in:(c + 1) * H_in, :]              # (H_in, W_in)
                tmp_c = jnp.dot(img_c, sx_mm,
                                preferred_element_type=jnp.float32)         # (H_in, TP)
                chans.append(jnp.sum(tmp_c * sy_t, axis=0, keepdims=True))  # (1, TP)
        else:
            img_i = img_ref[i]                                              # (C*H_in, W_in)
            tmp = jnp.dot(img_i, sx_mm,
                          preferred_element_type=jnp.float32)               # (C*H_in, TP)
            for c in range(C):
                tmp_c = tmp[c * H_in:(c + 1) * H_in, :]                     # (H_in, TP)
                chans.append(jnp.sum(tmp_c * sy_t, axis=0, keepdims=True))  # (1, TP)
        results.append(jnp.concatenate(chans, axis=0))                      # (C, TP)

    # Single coalesced store per grid step (no per-channel masked vst.msk).
    out_ref[...] = jnp.stack(results, axis=0).astype(out_ref.dtype)


def warp_perspective_border(x, m_inv, out_hw, *, affine=True, mxu_dtype=None):
    """dst(x, y) = src(m_inv @ (x, y, 1)), bilinear, border padding.  x: (B, C, H, W).

    mxu_dtype: optionally jnp.bfloat16 to run the MXU matmul with bf16 operands
    (single-pass MXU, ~1e-3 weight error); default None keeps full f32 numerics.
    """
    B, C, H_in, W_in = x.shape
    H_out, W_out = out_hw
    P = H_out * W_out

    mm_dtype = jnp.dtype(mxu_dtype) if mxu_dtype is not None else jnp.dtype(x.dtype)
    TP, BB, per_channel, vmem_limit = _choose_tiling(B, C, H_in, W_in, P, mm_dtype.itemsize)
    num_tiles = -(-P // TP)
    P_pad = num_tiles * TP                   # padded tail is sliced off below

    # Free reshape of contiguous NCHW (no HBM transpose pass); cast only for bf16 opt-in.
    x_in = x.reshape(B, C * H_in, W_in)
    if mm_dtype != x.dtype:
        x_in = x_in.astype(mm_dtype)
    minv_flat = m_inv.reshape(B * 9).astype(jnp.float32)

    # Precompute per-tile destination coordinates (kills the per-lane int32 div/mod).
    p = jnp.arange(P_pad, dtype=jnp.int32)
    yo = (p // W_out).astype(jnp.float32).reshape(num_tiles, TP)
    xo = (p % W_out).astype(jnp.float32).reshape(num_tiles, TP)
    coords = jnp.stack([xo, yo], axis=1)     # (num_tiles, 2, TP)

    kernel = functools.partial(_warp_kernel, H_in=H_in, W_in=W_in, C=C, BB=BB, TP=TP,
                               affine=affine, per_channel=per_channel, mm_dtype=mm_dtype)
    out_flat = pl.pallas_call(
        kernel,
        out_shape=jax.ShapeDtypeStruct((B, C, P_pad), x.dtype),
        grid_spec=pltpu.PrefetchScalarGridSpec(
            num_scalar_prefetch=0,
            grid=(B // BB, num_tiles),
            in_specs=[
                pl.BlockSpec(memory_space=pltpu.MemorySpace.SMEM),          # (B*9,)
                pl.BlockSpec((1, 2, TP), lambda b, t: (t, 0, 0)),           # tile coords
                # Source block: index_map is independent of the pixel-tile axis so the
                # same block is reused (no re-DMA) across tiles of one batch block.
                pl.BlockSpec((BB, C * H_in, W_in), lambda b, t: (b, 0, 0)),
            ],
            out_specs=pl.BlockSpec((BB, C, TP), lambda b, t: (b, 0, t)),
        ),
        compiler_params=pltpu.CompilerParams(
            dimension_semantics=("parallel", "parallel"),   # batch outer -> v7x 2-TC split
            vmem_limit_bytes=vmem_limit),
    )(minv_flat, coords, x_in)
    return out_flat[:, :, :P].reshape(B, C, H_out, W_out)


# ---------------------------------------------------------------------------
# Plain-JAX glue reproducing AugmentModel.__init__ / forward semantics.
# ---------------------------------------------------------------------------
def init_params(N, magn):
    magn_norm = magn / 10.0
    prob_norm = 1.0 / (K - 2)
    magn_logit = jnp.log(magn_norm / (1.0 - magn_norm))
    prob_logit = jnp.log(prob_norm / (1.0 - prob_norm))
    paramP = prob_logit * jnp.ones((K + J, N), jnp.float32)
    paramM = magn_logit * jnp.ones((K + J, N), jnp.float32)
    return paramP, paramM


def _get_rotation_matrix2d(center, angle_deg, scale):
    # kornia.get_rotation_matrix2d: shift(c) @ rot(angle) @ diag(scale) @ shift(-c), rows [0:2]
    Bn = center.shape[0]
    ang = jnp.deg2rad(angle_deg)
    c = jnp.cos(ang)
    s = jnp.sin(ang)
    eye = jnp.broadcast_to(jnp.eye(3, dtype=jnp.float32), (Bn, 3, 3))
    rot = eye.at[:, 0, 0].set(c).at[:, 0, 1].set(s).at[:, 1, 0].set(-s).at[:, 1, 1].set(c)
    scl = eye.at[:, 0, 0].set(scale[:, 0]).at[:, 1, 1].set(scale[:, 1])
    sh = eye.at[:, 0, 2].set(center[:, 0]).at[:, 1, 2].set(center[:, 1])
    sh_inv = eye.at[:, 0, 2].set(-center[:, 0]).at[:, 1, 2].set(-center[:, 1])
    aff = sh @ rot @ scl @ sh_inv
    return aff[:, :2, :]


def _affine_inverse_3x3(M):
    """Inverse of batched affine 3x3 matrices (last row [0, 0, 1]), exact in structure."""
    a = M[:, 0, 0]; b = M[:, 0, 1]; tx = M[:, 0, 2]
    c = M[:, 1, 0]; d = M[:, 1, 1]; ty = M[:, 1, 2]
    inv_det = 1.0 / (a * d - b * c)
    ia = d * inv_det
    ib = -b * inv_det
    ic = -c * inv_det
    idd = a * inv_det
    itx = -(ia * tx + ib * ty)
    ity = -(ic * tx + idd * ty)
    zeros = jnp.zeros_like(a)
    ones = jnp.ones_like(a)
    return jnp.stack([
        jnp.stack([ia, ib, itx], axis=-1),
        jnp.stack([ic, idd, ity], axis=-1),
        jnp.stack([zeros, zeros, ones], axis=-1),
    ], axis=1)


def _resize_minv(h_in, w_in, h_out, w_out, Bn):
    # bilinear resize, align_corners=False: src = (dst + 0.5) * (in/out) - 0.5
    sy = h_in / h_out
    sx = w_in / w_out
    m = jnp.array([[sx, 0.0, 0.5 * sx - 0.5],
                   [0.0, sy, 0.5 * sy - 0.5],
                   [0.0, 0.0, 1.0]], jnp.float32)
    return jnp.broadcast_to(m, (Bn, 3, 3))


def augment_forward(paramP, paramM, idx, x, key, *, N, apply=True, mode=1,
                    fuse_resize=False, mxu_dtype=None):
    B, C, H, W = x.shape
    eye3 = jnp.broadcast_to(jnp.eye(3, dtype=jnp.float32), (B, 3, 3))

    def _mode0(img, m_inv):
        if fuse_resize:
            # Single warp: compose up-resize, warp and down-resize sampling maps.
            # Numerics differ slightly from kornia's two-pass resample, hence the flag.
            comb = (_resize_minv(H, W, 4 * H, 4 * W, B) @ m_inv
                    @ _resize_minv(4 * H, 4 * W, H, W, B))
            return warp_perspective_border(img, comb, (H, W), affine=True, mxu_dtype=mxu_dtype)
        # TODO(synk): kornia-exact 3-pass path kept as default; the fused path above avoids
        # the 4Hx4W HBM round-trips but changes the two-pass resample numerics.
        x_up = warp_perspective_border(img, _resize_minv(H, W, 4 * H, 4 * W, B),
                                       (4 * H, 4 * W), affine=True, mxu_dtype=mxu_dtype)
        x_w = warp_perspective_border(x_up, m_inv, (4 * H, 4 * W), affine=True,
                                      mxu_dtype=mxu_dtype)
        return warp_perspective_border(x_w, _resize_minv(4 * H, 4 * W, H, W, B),
                                       (H, W), affine=True, mxu_dtype=mxu_dtype)

    if apply:
        sig = jax.nn.sigmoid
        if N == 1:
            pos = jnp.tile(jnp.log(sig(paramP)), (1, B))
            neg = jnp.tile(jnp.log(1.0 - sig(paramP)), (1, B))
            pM = jnp.tile(sig(paramM), (1, B))
        else:
            pos = jnp.log(sig(paramP[:, idx]))
            neg = jnp.log(1.0 - sig(paramP[:, idx]))
            pM = sig(paramM[:, idx])
        logits = jnp.concatenate([pos.reshape(-1, 1), neg.reshape(-1, 1)], axis=1)

        k_gumbel, k_norm = jax.random.split(key)
        # F.gumbel_softmax(tau=1, hard=True) forward pass == one-hot(argmax(logits + gumbel))
        g = jax.random.gumbel(k_gumbel, logits.shape, dtype=logits.dtype)
        hard = jax.nn.one_hot(jnp.argmax(logits + g, axis=1), 2, dtype=logits.dtype)
        sampleP = hard[:, 0].reshape(K + J, B)[:K]
        sampleM = pM[:K] * jax.random.normal(k_norm, (K, B), dtype=jnp.float32)

        ANG = sampleP[0] * sampleM[0] * ANGLE[1]
        # reproduces the original cat(...).view(-1, 2) construction exactly (quirky for B>1)
        CTR = jnp.concatenate([
            jnp.floor_divide(W * jnp.ones(B, jnp.float32), 2.0),
            jnp.floor_divide(H * jnp.ones(B, jnp.float32), 2.0),
        ]).reshape(-1, 2)
        SCL = jnp.zeros_like(CTR)
        SCL = SCL.at[:, 0].set(SCALE[0] + sampleP[5] * sampleM[5] * SCALE[1])
        SCL = SCL.at[:, 1].set(SCALE[0] + sampleP[6] * sampleM[6] * SCALE[1])

        R = eye3.at[:, 0:2].set(_get_rotation_matrix2d(CTR, ANG, SCL))
        T = (eye3.at[:, 0, 2].set(W * sampleP[1] * sampleM[1] * TRANS[1])
                  .at[:, 1, 2].set(H * sampleP[2] * sampleM[2] * TRANS[1]))
        S = (eye3.at[:, 0, 1].set(sampleP[3] * sampleM[3] * SHEAR[1])
                  .at[:, 1, 0].set(sampleP[4] * sampleM[4] * SHEAR[1]))
        M = S @ T @ R
        # kornia.warp_perspective samples src at M^{-1} @ dst (M maps src -> dst).
        # M is affine by construction, so invert analytically (keeps last row exact).
        M_inv = _affine_inverse_3x3(M)

        if mode == 0:
            return _mode0(x, M_inv)
        return warp_perspective_border(x, M_inv, (H, W), affine=True, mxu_dtype=mxu_dtype)
    else:
        if mode == 0:
            return _mode0(x, eye3)
        return x


if __name__ == "__main__":
    B, C, H, W = 2, 4, 16, 16
    N = 1
    magn = 5.0

    paramP, paramM = init_params(N, magn)

    key = jax.random.PRNGKey(0)
    kx, kfwd = jax.random.split(key)
    x = jax.random.normal(kx, (B, C, H, W), dtype=jnp.float32)
    idx = jnp.zeros((B,), dtype=jnp.int32)

    # sanity check: identity warp through the Pallas kernel reproduces the input exactly
    eye_m = jnp.broadcast_to(jnp.eye(3, dtype=jnp.float32), (B, 3, 3))
    x_id = jax.block_until_ready(warp_perspective_border(x, eye_m, (H, W)))
    assert jnp.allclose(x_id, x, atol=1e-5), "identity warp mismatch"

    # full AugmentModel forward (apply=True, mode=1)
    out = augment_forward(paramP, paramM, idx, x, kfwd, N=N, apply=True, mode=1)
    out = jax.block_until_ready(out)
    assert out.shape == (B, C, H, W)
    assert bool(jnp.all(jnp.isfinite(out)))

    # mode=0 path (kornia-exact 3-pass: 4x upsample -> warp -> 4x downsample)
    out0 = augment_forward(paramP, paramM, idx, x, kfwd, N=N, apply=True, mode=0)
    out0 = jax.block_until_ready(out0)
    assert out0.shape == (B, C, H, W)
    assert bool(jnp.all(jnp.isfinite(out0)))

    print("KERNEL_OK")
</pallas_src>

<mosaic_0001>
module attributes {stable_mosaic.version = 11 : i64} {
  func.func @_warp_kernel(%arg0: i32, %arg1: i32, %arg2: memref<18xf32, #tpu.memory_space<smem>>, %arg3: memref<1x2x256xf32, #tpu.memory_space<vmem>>, %arg4: memref<2x64x16xf32, #tpu.memory_space<vmem>>, %arg5: memref<2x4x256xf32, #tpu.memory_space<vmem>>) attributes {dimension_semantics = [#tpu.dimension_semantics<parallel>, #tpu.dimension_semantics<parallel>], iteration_bounds = array<i64: 1, 1>, scalar_prefetch = 0 : i64, scratch_operands = 0 : i64, tpu.core_type = #tpu.core_type<tc>, window_params = [{transform_indices = @transform_0, window_bounds = array<i64: 18>}, {transform_indices = @transform_1, window_bounds = array<i64: 1, 2, 256>}, {transform_indices = @transform_2, window_bounds = array<i64: 2, 64, 16>}, {transform_indices = @transform_3, window_bounds = array<i64: 2, 4, 256>}]} {
    %c0 = arith.constant 0 : index
    %c0_0 = arith.constant 0 : index
    %c0_1 = arith.constant 0 : index
    %0 = vector.load %arg3[%c0, %c0_0, %c0_1] : memref<1x2x256xf32, #tpu.memory_space<vmem>>, vector<1x2x256xf32>
    %1 = vector.shape_cast %0 : vector<1x2x256xf32> to vector<2x256xf32>
    %2 = vector.extract_strided_slice %1 {offsets = [0, 0], sizes = [1, 256], strides = [1, 1]} : vector<2x256xf32> to vector<1x256xf32>
    %3 = vector.extract_strided_slice %1 {offsets = [1, 0], sizes = [1, 256], strides = [1, 1]} : vector<2x256xf32> to vector<1x256xf32>
    %4 = tpu.iota {dimensions = array<i32: 0>} : vector<16x256xi32>
    %5 = arith.sitofp %4 : vector<16x256xi32> to vector<16x256xf32>
    %6 = tpu.iota {dimensions = array<i32: 0>} : vector<16x256xi32>
    %7 = arith.sitofp %6 : vector<16x256xi32> to vector<16x256xf32>
    %c2_i32 = arith.constant 2 : i32
    %8 = arith.muli %arg0, %c2_i32 : i32
    %c0_i32 = arith.constant 0 : i32
    %9 = arith.addi %8, %c0_i32 : i32
    %c9_i32 = arith.constant 9 : i32
    %10 = arith.muli %9, %c9_i32 : i32
    %c0_i32_2 = arith.constant 0 : i32
    %11 = arith.addi %10, %c0_i32_2 : i32
    %12 = arith.index_cast %11 : i32 to index
    %13 = memref.load %arg2[%12] : memref<18xf32, #tpu.memory_space<smem>>
    %c1_i32 = arith.constant 1 : i32
    %14 = arith.addi %10, %c1_i32 : i32
    %15 = arith.index_cast %14 : i32 to index
    %16 = memref.load %arg2[%15] : memref<18xf32, #tpu.memory_space<smem>>
    %c2_i32_3 = arith.constant 2 : i32
    %17 = arith.addi %10, %c2_i32_3 : i32
    %18 = arith.index_cast %17 : i32 to index
    %19 = memref.load %arg2[%18] : memref<18xf32, #tpu.memory_space<smem>>
    %c3_i32 = arith.constant 3 : i32
    %20 = arith.addi %10, %c3_i32 : i32
    %21 = arith.index_cast %20 : i32 to index
    %22 = memref.load %arg2[%21] : memref<18xf32, #tpu.memory_space<smem>>
    %c4_i32 = arith.constant 4 : i32
    %23 = arith.addi %10, %c4_i32 : i32
    %24 = arith.index_cast %23 : i32 to index
    %25 = memref.load %arg2[%24] : memref<18xf32, #tpu.memory_space<smem>>
    %c5_i32 = arith.constant 5 : i32
    %26 = arith.addi %10, %c5_i32 : i32
    %27 = arith.index_cast %26 : i32 to index
    %28 = memref.load %arg2[%27] : memref<18xf32, #tpu.memory_space<smem>>
    %29 = vector.broadcast %13 : f32 to vector<1x256xf32>
    %30 = arith.mulf %29, %2 : vector<1x256xf32>
    %31 = vector.broadcast %16 : f32 to vector<1x256xf32>
    %32 = arith.mulf %31, %3 : vector<1x256xf32>
    %33 = arith.addf %30, %32 : vector<1x256xf32>
    %34 = vector.broadcast %19 : f32 to vector<1x256xf32>
    %35 = arith.addf %33, %34 : vector<1x256xf32>
    %36 = vector.broadcast %22 : f32 to vector<1x256xf32>
    %37 = arith.mulf %36, %2 : vector<1x256xf32>
    %38 = vector.broadcast %25 : f32 to vector<1x256xf32>
    %39 = arith.mulf %38, %3 : vector<1x256xf32>
    %40 = arith.addf %37, %39 : vector<1x256xf32>
    %41 = vector.broadcast %28 : f32 to vector<1x256xf32>
    %42 = arith.addf %40, %41 : vector<1x256xf32>
    %cst = arith.constant 0.000000e+00 : f32
    %cst_4 = arith.constant 1.500000e+01 : f32
    %43 = vector.broadcast %cst : f32 to vector<1x256xf32>
    %44 = arith.maximumf %43, %35 : vector<1x256xf32>
    %45 = vector.broadcast %cst_4 : f32 to vector<1x256xf32>
    %46 = arith.minimumf %45, %44 : vector<1x256xf32>
    %cst_5 = arith.constant 0.000000e+00 : f32
    %cst_6 = arith.constant 1.500000e+01 : f32
    %47 = vector.broadcast %cst_5 : f32 to vector<1x256xf32>
    %48 = arith.maximumf %47, %42 : vector<1x256xf32>
    %49 = vector.broadcast %cst_6 : f32 to vector<1x256xf32>
    %50 = arith.minimumf %49, %48 : vector<1x256xf32>
    %51 = vector.broadcast %50 : vector<1x256xf32> to vector<16x256xf32>
    %52 = arith.subf %5, %51 : vector<16x256xf32>
    %53 = math.absf %52 : vector<16x256xf32>
    %cst_7 = arith.constant 1.000000e+00 : f32
    %54 = vector.broadcast %cst_7 : f32 to vector<16x256xf32>
    %55 = arith.subf %54, %53 : vector<16x256xf32>
    %cst_8 = arith.constant 0.000000e+00 : f32
    %56 = vector.broadcast %cst_8 : f32 to vector<16x256xf32>
    %57 = arith.maximumf %56, %55 : vector<16x256xf32>
    %58 = vector.broadcast %46 : vector<1x256xf32> to vector<16x256xf32>
    %59 = arith.subf %7, %58 : vector<16x256xf32>
    %60 = math.absf %59 : vector<16x256xf32>
    %cst_9 = arith.constant 1.000000e+00 : f32
    %61 = vector.broadcast %cst_9 : f32 to vector<16x256xf32>
    %62 = arith.subf %61, %60 : vector<16x256xf32>
    %cst_10 = arith.constant 0.000000e+00 : f32
    %63 = vector.broadcast %cst_10 : f32 to vector<16x256xf32>
    %64 = arith.maximumf %63, %62 : vector<16x256xf32>
    %c0_11 = arith.constant 0 : index
    %c0_12 = arith.constant 0 : index
    %c0_13 = arith.constant 0 : index
    %65 = vector.load %arg4[%c0_11, %c0_12, %c0_13] : memref<2x64x16xf32, #tpu.memory_space<vmem>>, vector<1x64x16xf32>
    %66 = vector.shape_cast %65 : vector<1x64x16xf32> to vector<64x16xf32>
    %cst_14 = arith.constant dense<0.000000e+00> : vector<64x256xf32>
    %67 = tpu.matmul %66, %64, %cst_14 {dimension_numbers = #tpu.dot_dimension_numbers<[1], [0], [0], [1], [0, 0, 1, 1], [], []>} : vector<64x16xf32>, vector<16x256xf32>, vector<64x256xf32> -> vector<64x256xf32>
    %68 = vector.extract_strided_slice %67 {offsets = [0, 0], sizes = [16, 256], strides = [1, 1]} : vector<64x256xf32> to vector<16x256xf32>
    %69 = arith.mulf %68, %57 : vector<16x256xf32>
    %cst_15 = arith.constant dense<0.000000e+00> : vector<256xf32>
    %70 = vector.multi_reduction <add>, %69, %cst_15 [0] : vector<16x256xf32> to vector<256xf32>
    %71 = vector.shape_cast %70 : vector<256xf32> to vector<1x256xf32>
    %72 = vector.extract_strided_slice %67 {offsets = [16, 0], sizes = [16, 256], strides = [1, 1]} : vector<64x256xf32> to vector<16x256xf32>
    %73 = arith.mulf %72, %57 : vector<16x256xf32>
    %cst_16 = arith.constant dense<0.000000e+00> : vector<256xf32>
    %74 = vector.multi_reduction <add>, %73, %cst_16 [0] : vector<16x256xf32> to vector<256xf32>
    %75 = vector.shape_cast %74 : vector<256xf32> to vector<1x256xf32>
    %76 = vector.extract_strided_slice %67 {offsets = [32, 0], sizes = [16, 256], strides = [1, 1]} : vector<64x256xf32> to vector<16x256xf32>
    %77 = arith.mulf %76, %57 : vector<16x256xf32>
    %cst_17 = arith.constant dense<0.000000e+00> : vector<256xf32>
    %78 = vector.multi_reduction <add>, %77, %cst_17 [0] : vector<16x256xf32> to vector<256xf32>
    %79 = vector.shape_cast %78 : vector<256xf32> to vector<1x256xf32>
    %80 = vector.extract_strided_slice %67 {offsets = [48, 0], sizes = [16, 256], strides = [1, 1]} : vector<64x256xf32> to vector<16x256xf32>
    %81 = arith.mulf %80, %57 : vector<16x256xf32>
    %cst_18 = arith.constant dense<0.000000e+00> : vector<256xf32>
    %82 = vector.multi_reduction <add>, %81, %cst_18 [0] : vector<16x256xf32> to vector<256xf32>
    %83 = vector.shape_cast %82 : vector<256xf32> to vector<1x256xf32>
    %84 = tpu.concatenate %71, %75, %79, %83 in 0 : vector<1x256xf32>, vector<1x256xf32>, vector<1x256xf32>, vector<1x256xf32> -> vector<4x256xf32>
    %c2_i32_19 = arith.constant 2 : i32
    %85 = arith.muli %arg0, %c2_i32_19 : i32
    %c1_i32_20 = arith.constant 1 : i32
    %86 = arith.addi %85, %c1_i32_20 : i32
    %c9_i32_21 = arith.constant 9 : i32
    %87 = arith.muli %86, %c9_i32_21 : i32
    %c0_i32_22 = arith.constant 0 : i32
    %88 = arith.addi %87, %c0_i32_22 : i32
    %89 = arith.index_cast %88 : i32 to index
    %90 = memref.load %arg2[%89] : memref<18xf32, #tpu.memory_space<smem>>
    %c1_i32_23 = arith.constant 1 : i32
    %91 = arith.addi %87, %c1_i32_23 : i32
    %92 = arith.index_cast %91 : i32 to index
    %93 = memref.load %arg2[%92] : memref<18xf32, #tpu.memory_space<smem>>
    %c2_i32_24 = arith.constant 2 : i32
    %94 = arith.addi %87, %c2_i32_24 : i32
    %95 = arith.index_cast %94 : i32 to index
    %96 = memref.load %arg2[%95] : memref<18xf32, #tpu.memory_space<smem>>
    %c3_i32_25 = arith.constant 3 : i32
    %97 = arith.addi %87, %c3_i32_25 : i32
    %98 = arith.index_cast %97 : i32 to index
    %99 = memref.load %arg2[%98] : memref<18xf32, #tpu.memory_space<smem>>
    %c4_i32_26 = arith.constant 4 : i32
    %100 = arith.addi %87, %c4_i32_26 : i32
    %101 = arith.index_cast %100 : i32 to index
    %102 = memref.load %arg2[%101] : memref<18xf32, #tpu.memory_space<smem>>
    %c5_i32_27 = arith.constant 5 : i32
    %103 = arith.addi %87, %c5_i32_27 : i32
    %104 = arith.index_cast %103 : i32 to index
    %105 = memref.load %arg2[%104] : memref<18xf32, #tpu.memory_space<smem>>
    %106 = vector.broadcast %90 : f32 to vector<1x256xf32>
    %107 = arith.mulf %106, %2 : vector<1x256xf32>
    %108 = vector.broadcast %93 : f32 to vector<1x256xf32>
    %109 = arith.mulf %108, %3 : vector<1x256xf32>
    %110 = arith.addf %107, %109 : vector<1x256xf32>
    %111 = vector.broadcast %96 : f32 to vector<1x256xf32>
    %112 = arith.addf %110, %111 : vector<1x256xf32>
    %113 = vector.broadcast %99 : f32 to vector<1x256xf32>
    %114 = arith.mulf %113, %2 : vector<1x256xf32>
    %115 = vector.broadcast %102 : f32 to vector<1x256xf32>
    %116 = arith.mulf %115, %3 : vector<1x256xf32>
    %117 = arith.addf %114, %116 : vector<1x256xf32>
    %118 = vector.broadcast %105 : f32 to vector<1x256xf32>
    %119 = arith.addf %117, %118 : vector<1x256xf32>
    %cst_28 = arith.constant 0.000000e+00 : f32
    %cst_29 = arith.constant 1.500000e+01 : f32
    %120 = vector.broadcast %cst_28 : f32 to vector<1x256xf32>
    %121 = arith.maximumf %120, %112 : vector<1x256xf32>
    %122 = vector.broadcast %cst_29 : f32 to vector<1x256xf32>
    %123 = arith.minimumf %122, %121 : vector<1x256xf32>
    %cst_30 = arith.constant 0.000000e+00 : f32
    %cst_31 = arith.constant 1.500000e+01 : f32
    %124 = vector.broadcast %cst_30 : f32 to vector<1x256xf32>
    %125 = arith.maximumf %124, %119 : vector<1x256xf32>
    %126 = vector.broadcast %cst_31 : f32 to vector<1x256xf32>
    %127 = arith.minimumf %126, %125 : vector<1x256xf32>
    %128 = vector.broadcast %127 : vector<1x256xf32> to vector<16x256xf32>
    %129 = arith.subf %5, %128 : vector<16x256xf32>
    %130 = math.absf %129 : vector<16x256xf32>
    %cst_32 = arith.constant 1.000000e+00 : f32
    %131 = vector.broadcast %cst_32 : f32 to vector<16x256xf32>
    %132 = arith.subf %131, %130 : vector<16x256xf32>
    %cst_33 = arith.constant 0.000000e+00 : f32
    %133 = vector.broadcast %cst_33 : f32 to vector<16x256xf32>
    %134 = arith.maximumf %133, %132 : vector<16x256xf32>
    %135 = vector.broadcast %123 : vector<1x256xf32> to vector<16x256xf32>
    %136 = arith.subf %7, %135 : vector<16x256xf32>
    %137 = math.absf %136 : vector<16x256xf32>
    %cst_34 = arith.constant 1.000000e+00 : f32
    %138 = vector.broadcast %cst_34 : f32 to vector<16x256xf32>
    %139 = arith.subf %138, %137 : vector<16x256xf32>
    %cst_35 = arith.constant 0.000000e+00 : f32
    %140 = vector.broadcast %cst_35 : f32 to vector<16x256xf32>
    %141 = arith.maximumf %140, %139 : vector<16x256xf32>
    %c1 = arith.constant 1 : index
    %c0_36 = arith.constant 0 : index
    %c0_37 = arith.constant 0 : index
    %142 = vector.load %arg4[%c1, %c0_36, %c0_37] : memref<2x64x16xf32, #tpu.memory_space<vmem>>, vector<1x64x16xf32>
    %143 = vector.shape_cast %142 : vector<1x64x16xf32> to vector<64x16xf32>
    %cst_38 = arith.constant dense<0.000000e+00> : vector<64x256xf32>
    %144 = tpu.matmul %143, %141, %cst_38 {dimension_numbers = #tpu.dot_dimension_numbers<[1], [0], [0], [1], [0, 0, 1, 1], [], []>} : vector<64x16xf32>, vector<16x256xf32>, vector<64x256xf32> -> vector<64x256xf32>
    %145 = vector.extract_strided_slice %144 {offsets = [0, 0], sizes = [16, 256], strides = [1, 1]} : vector<64x256xf32> to vector<16x256xf32>
    %146 = arith.mulf %145, %134 : vector<16x256xf32>
    %cst_39 = arith.constant dense<0.000000e+00> : vector<256xf32>
    %147 = vector.multi_reduction <add>, %146, %cst_39 [0] : vector<16x256xf32> to vector<256xf32>
    %148 = vector.shape_cast %147 : vector<256xf32> to vector<1x256xf32>
    %149 = vector.extract_strided_slice %144 {offsets = [16, 0], sizes = [16, 256], strides = [1, 1]} : vector<64x256xf32> to vector<16x256xf32>
    %150 = arith.mulf %149, %134 : vector<16x256xf32>
    %cst_40 = arith.constant dense<0.000000e+00> : vector<256xf32>
    %151 = vector.multi_reduction <add>, %150, %cst_40 [0] : vector<16x256xf32> to vector<256xf32>
    %152 = vector.shape_cast %151 : vector<256xf32> to vector<1x256xf32>
    %153 = vector.extract_strided_slice %144 {offsets = [32, 0], sizes = [16, 256], strides = [1, 1]} : vector<64x256xf32> to vector<16x256xf32>
    %154 = arith.mulf %153, %134 : vector<16x256xf32>
    %cst_41 = arith.constant dense<0.000000e+00> : vector<256xf32>
    %155 = vector.multi_reduction <add>, %154, %cst_41 [0] : vector<16x256xf32> to vector<256xf32>
    %156 = vector.shape_cast %155 : vector<256xf32> to vector<1x256xf32>
    %157 = vector.extract_strided_slice %144 {offsets = [48, 0], sizes = [16, 256], strides = [1, 1]} : vector<64x256xf32> to vector<16x256xf32>
    %158 = arith.mulf %157, %134 : vector<16x256xf32>
    %cst_42 = arith.constant dense<0.000000e+00> : vector<256xf32>
    %159 = vector.multi_reduction <add>, %158, %cst_42 [0] : vector<16x256xf32> to vector<256xf32>
    %160 = vector.shape_cast %159 : vector<256xf32> to vector<1x256xf32>
    %161 = tpu.concatenate %148, %152, %156, %160 in 0 : vector<1x256xf32>, vector<1x256xf32>, vector<1x256xf32>, vector<1x256xf32> -> vector<4x256xf32>
    %162 = vector.shape_cast %84 : vector<4x256xf32> to vector<1x4x256xf32>
    %163 = vector.shape_cast %161 : vector<4x256xf32> to vector<1x4x256xf32>
    %164 = tpu.concatenate %162, %163 in 0 : vector<1x4x256xf32>, vector<1x4x256xf32> -> vector<2x4x256xf32>
    %c0_43 = arith.constant 0 : index
    %c0_44 = arith.constant 0 : index
    %c0_45 = arith.constant 0 : index
    %165 = vector.load %arg5[%c0_43, %c0_44, %c0_45] : memref<2x4x256xf32, #tpu.memory_space<vmem>>, vector<2x4x256xf32>
    tpu.vector_store %arg5[%c0_43, %c0_44, %c0_45], %164 {strides = array<i32>} : memref<2x4x256xf32, #tpu.memory_space<vmem>>, vector<2x4x256xf32>,
    return
  }
  func.func @transform_0(%arg0: i32, %arg1: i32) -> i32 {
    %c0_i32 = arith.constant 0 : i32
    %c0_i32_0 = arith.constant 0 : i32
    return %c0_i32 : i32
  }
  func.func @transform_1(%arg0: i32, %arg1: i32) -> (i32, i32, i32) {
    %c0_i32 = arith.constant 0 : i32
    %c0_i32_0 = arith.constant 0 : i32
    %c0_i32_1 = arith.constant 0 : i32
    return %arg1, %c0_i32, %c0_i32_0 : i32, i32, i32
  }
  func.func @transform_2(%arg0: i32, %arg1: i32) -> (i32, i32, i32) {
    %c0_i32 = arith.constant 0 : i32
    %c0_i32_0 = arith.constant 0 : i32
    %c0_i32_1 = arith.constant 0 : i32
    return %arg0, %c0_i32, %c0_i32_0 : i32, i32, i32
  }
  func.func @transform_3(%arg0: i32, %arg1: i32) -> (i32, i32, i32) {
    %c0_i32 = arith.constant 0 : i32
    %c0_i32_0 = arith.constant 0 : i32
    return %arg0, %c0_i32, %arg1 : i32, i32, i32
  }
}

</mosaic_0001>

<bundles_post_ra>
// kernel: tpu_custom_call.1
= control target key start
LH: loop header
LB: loop body
LE: loop exit
PB: predicated region body
PF: predicated region fallthrough
CT: control target
= control target key end

     0   :  { %8 = vsyncpa [#allocation4], 0  ;;  %s1052_s0 = inlined_call_operand.vmem [shape: f32[18], index: 0, kind: input, shape index: {}]   ;;  %s1053_s1 = inlined_call_operand.vmem [shape: f32[1,2,256], index: 1, kind: input, shape index: {}]   ;;  %s1054_s2 = inlined_call_operand.vmem [shape: f32[2,64,16], index: 2, kind: input, shape index: {}]   ;;  %s1055_s3 = inlined_call_operand.hbm [shape: f32[2,4,256], index: 3, kind: output, shape index: {}]  }
   0x1   :  { %9 = vsyncpa [#allocation3], 0  ;;  %s16_s14 = sshll.u32 %s1052_s0, 4  ;;  %s17_s14 = int_to_ptr.vmem [resolvable:$true] %s16_s14 }
   0x2   :  { %s774_s15 = scalar_lea.vmem %s17_s14, 16  ;;  %p779_p1 = scmp.lt.s32.totalorder %s17_s14, %s17_s14 }
   0x3   :  { %p775_p0 = scmp.ne.s32.totalorder %s17_s14, %s774_s15  ;;  %p780_p2 = scmp.lt.s32.totalorder %s774_s15, %s774_s15 }
   0x5   :  { %p781_p3 = por %p780_p2, %p779_p1 }
   0x7   :  { %p782_p4 = pnand %p781_p3, %p775_p0 }
   0x9   :  { %785 = shalt.err (!%p782_p4)
}
   0xa   :  { %s810_s16 = smov [#allocation2]  }
   0xb   :  { %19 = dma.vmem_to_smem %s17_s14, 16, %s810_s16, [#allocation4]  }
   0xc   :  { %806 = dma.done.wait [#allocation4], 16  }
   0xd   :  { %807 = vsyncadd [#allocation4], 4294967280 }
   0xe   :  { %27 = sfence }
   0xf   :  { %s35_s17 = sld [smem:[#allocation2]]  ;;  %v811_v0 = vmov 0.0   ;;  %v843_v1 = vld [vmem:[%s1053_s1] sm:$0xf]  ;;  %v29_v4 = vlaneseq  ;;  %vm150_vm0 = vcmask 130048   ;;  %vm360_vm1 = vcmask 1040384  }
  0x10   :  { %s730_s18 = sld [smem:[#allocation2 + $0x1]]  ;;  %239 = vmatprep.mubr.f32.mxu0 %v811_v0  ;;  %576 = vmatprep.mubr.f32.mxu1 %v811_v0  ;;  %vm363_vm2 = vcmask 1041408   ;;  %vm366_vm3 = vcmask 1042432  }
  0x11   :  { %s731_s0 = sld [smem:[#allocation2 + $0x2]]  ;;  %v30_v13 = vshrl.u32 %v29_v4, 7 }
  0x12   :  { %s745_s19 = sld [smem:[#allocation2 + $0x9]] }
  0x13   :  { %s746_s20 = sld [smem:[#allocation2 + $0xa]]  ;;  %v31_v19 = vadd.s32 8, %v30_v13  ;;  %v849_v21 = vsub.s32 0, %v30_v13  ;;  %v851_v22 = vsub.s32 2, %v30_v13  ;;  %v853_v26 = vcvt.s32.f32 %v30_v13  ;;  %v145_v13 = vld [vmem:[%s1054_s2 + $0x18] sm:$0xff] }
  0x14   :  { %s747_s23 = sld [smem:[#allocation2 + $0xb]] }
  0x15   :  { %v46_v2 = vstv %s35_s17  ;;  %v855_v27 = vcvt.s32.f32 %v31_v19  ;;  %v148_v19 = vld [vmem:[%s1054_s2 + $0x30] sm:$0xff]  ;;  %s733_s26 = sld [smem:[#allocation2 + $0x4]] }
  0x16   :  { %v48_v3 = vstv %s730_s18  ;;  %v47_v5 = vmul.f32 %v46_v2, %v843_v1  ;;  %s749_s27 = sld [smem:[#allocation2 + $0xd]] }
  0x17   :  { %v49_v6 = vmul.f32 %v48_v3, %v843_v1  ;;  %v55_v10 = vstv %s731_s0  ;;  %s732_s28 = sld [smem:[#allocation2 + $0x3]] }
  0x18   :  { %v383_v7 = vstv %s745_s19  ;;  %s748_s29 = sld [smem:[#allocation2 + $0xc]] }
  0x19   :  { %v735_v8 = vrot.slane %v49_v6, 9  ;;  %v385_v9 = vstv %s746_s20  ;;  %v384_v11 = vmul.f32 %v383_v7, %v843_v1  ;;  %v142_v6 = vld [vmem:[%s1054_s2] sm:$0xff]  ;;  %s734_s30 = sld [smem:[#allocation2 + $0x5]] }
  0x1a   :  { %v386_v12 = vmul.f32 %v385_v9, %v843_v1  ;;  %v392_v17 = vstv %s747_s23  ;;  %v143_v9 = vld [vmem:[%s1054_s2 + $0x8] sm:$0xff]  ;;  %s750_s4 = sld [smem:[#allocation2 + $0xe]] }
  0x1b   :  { %v54_v14 = vadd.f32 %v735_v8, %v47_v5  ;;  %v753_v8 = vld [vmem:[%s1054_s2 + $0x40] sm:$0xff] }
  0x1c   :  { %v751_v15 = vrot.slane %v386_v12, 9  ;;  %v755_v12 = vld [vmem:[%s1054_s2 + $0x50] sm:$0xff] }
  0x1d   :  { %v56_v16 = vadd.f32 %v55_v10, %v54_v14  ;;  %v754_v10 = vld [vmem:[%s1054_s2 + $0x48] sm:$0xff]  ;;  %v756_v14 = vld [vmem:[%s1054_s2 + $0x58] sm:$0xff] }
  0x1e   :  { %v391_v18 = vadd.f32 %v751_v15, %v384_v11  ;;  %v144_v11 = vld [vmem:[%s1054_s2 + $0x10] sm:$0xff]  ;;  %v146_v15 = vld [vmem:[%s1054_s2 + $0x20] sm:$0xff] }
  0x1f   :  { %v68_v20 = vmax.f32 %v56_v16, 0.0  ;;  %v757_v16 = vld [vmem:[%s1054_s2 + $0x60] sm:$0xff] }
  0x20   :  { %v393_v23 = vadd.f32 %v392_v17, %v391_v18  ;;  %v147_v17 = vld [vmem:[%s1054_s2 + $0x28] sm:$0xff] }
  0x21   :  { %v69_v24 = vmin.f32 %v68_v20, 15.0  ;;  %v758_v18 = vld [vmem:[%s1054_s2 + $0x68] sm:$0xff]  ;;  %v759_v20 = vld [vmem:[%s1054_s2 + $0x70] sm:$0xff] }
  0x22   :  { %v405_v25 = vmax.f32 %v393_v23, 0.0  ;;  %v149_v23 = vld [vmem:[%s1054_s2 + $0x38] sm:$0xff] }
  0x23   :  { %v115_v28 = vrot.slane %v69_v24, %v851_v22  ;;  %v111_v29 = vrot.slane %v69_v24, %v849_v21  ;;  %v760_v24 = vld [vmem:[%s1054_s2 + $0x78] sm:$0xff]  ;;  %s812_s2 = smov [#allocation5]  }
  0x24   :  { %v406_v30 = vmin.f32 %v405_v25, 15.0  ;;  %v59_v25 = vstv %s733_s26  ;;  %s718_s5 = sshll.u32 %s812_s2, 4  ;;  %s719_s5 = int_to_ptr.vmem [resolvable:$true] %s718_s5 }
  0x25   :  { %v125_v31 = vrot.slane %v115_v28, %v849_v21  ;;  %v121_v32 = vrot.slane %v111_v29, %v849_v21  ;;  %v60_v28 = vmul.f32 %v59_v25, %v843_v1  ;;  %v396_v29 = vstv %s749_s27  ;;  %s786_s6 = scalar_lea.vmem %s719_s5, 256  ;;  %p791_p6 = scmp.lt.s32.totalorder %s719_s5, %s719_s5 }
  0x26   :  { %v452_v33 = vrot.slane %v406_v30, %v851_v22  ;;  %v448_v34 = vrot.slane %v406_v30, %v849_v21  ;;  %v57_v30 = vstv %s732_s28  ;;  %p787_p5 = scmp.ne.s32.totalorder %s719_s5, %s786_s6  ;;  %p792_p7 = scmp.lt.s32.totalorder %s786_s6, %s786_s6 }
  0x27   :  { %v129_v35 = vsub.f32 %v855_v27, %v125_v31  ;;  %v128_v36 = vsub.f32 %v855_v27, %v121_v32  ;;  %v127_v37 = vsub.f32 %v853_v26, %v125_v31  ;;  %v126_v38 = vsub.f32 %v853_v26, %v121_v32 }
  0x28   :  { %v462_v39 = vrot.slane %v452_v33, %v849_v21  ;;  %v458_v40 = vrot.slane %v448_v34, %v849_v21  ;;  %v58_v31 = vmul.f32 %v57_v30, %v843_v1  ;;  %v736_v32 = vrot.slane %v60_v28, 9  ;;  %p793_p8 = por %p792_p7, %p791_p6 }
  0x29   :  { %v133_v41 = vand.u32 2147483647, %v129_v35  ;;  %v132_v42 = vand.u32 2147483647, %v128_v36  ;;  %v131_v43 = vand.u32 2147483647, %v127_v37  ;;  %v394_v33 = vstv %s748_s29 }
  0x2a   :  { %v466_v44 = vsub.f32 %v855_v27, %v462_v39  ;;  %v465_v45 = vsub.f32 %v855_v27, %v458_v40  ;;  %v464_v46 = vsub.f32 %v853_v26, %v462_v39  ;;  %v130_v47 = vand.u32 2147483647, %v126_v38  ;;  %p794_p9 = pnand %p793_p8, %p787_p5 }
  0x2b   :  { %v137_v48 = vsub.f32 1.0, %v133_v41  ;;  %v136_v49 = vsub.f32 1.0, %v132_v42  ;;  %v135_v50 = vsub.f32 1.0, %v131_v43  ;;  %v463_v51 = vsub.f32 %v853_v26, %v458_v40 }
  0x2c   :  { %v470_v52 = vand.u32 2147483647, %v466_v44  ;;  %v469_v53 = vand.u32 2147483647, %v465_v45  ;;  %v468_v54 = vand.u32 2147483647, %v464_v46  ;;  %v395_v34 = vmul.f32 %v394_v33, %v843_v1 }
  0x2d   :  { %v141_v55 = vmax.f32 %v137_v48, 0.0  ;;  %v140_v56 = vmax.f32 %v136_v49, 0.0  ;;  %v139_v57 = vmax.f32 %v135_v50, 0.0  ;;  %v134_v58 = vsub.f32 1.0, %v130_v47 }
  0x2e   :  { %v474_v59 = vsub.f32 1.0, %v470_v52  ;;  %v473_v60 = vsub.f32 1.0, %v469_v53  ;;  %v472_v61 = vsub.f32 1.0, %v468_v54  ;;  %v467_v62 = vand.u32 2147483647, %v463_v51 }
  0x2f   :  { %203 = vmatprep.subr.mxu0 %v141_v55  ;;  %v138_v63 = vmax.f32 %v134_v58, 0.0  ;;  %v65_v36 = vadd.f32 %v736_v32, %v58_v31  ;;  %v66_v37 = vstv %s734_s30  ;;  %v403_v40 = vstv %s750_s4 }
  0x30   :  { %v478_v2 = vmax.f32 %v474_v59, 0.0  ;;  %204 = vmatpush1.msra.mxu0 %v140_v56  ;;  %v477_v3 = vmax.f32 %v473_v60, 0.0  ;;  %v476_v4 = vmax.f32 %v472_v61, 0.0  ;;  %v471_v5 = vsub.f32 1.0, %v467_v62 }
  0x31   :  { %205 = vmatprep.subr.mxu0 %v139_v57  ;;  %v67_v39 = vadd.f32 %v66_v37, %v65_v36 }
  0x32   :  { %540 = vmatprep.subr.mxu1 %v478_v2  ;;  %206 = vmatpush1.msra.mxu0 %v138_v63  ;;  %v475_v7 = vmax.f32 %v471_v5, 0.0 }
  0x33   :  { %541 = vmatpush1.msra.mxu1 %v477_v3  ;;  %737 = vmatmul.mubr.msk.f32.vlgmr.msra.gmra.mxu0 %vm150_vm0, %v142_v6  ;;  %v70_v42 = vmax.f32 %v67_v39, 0.0 }
  0x34   :  { %542 = vmatprep.subr.mxu1 %v476_v4  ;;  %245 = vmatprep.mubr.f32.mxu0 %v811_v0 }
  0x35   :  { %543 = vmatpush1.msra.mxu1 %v475_v7  ;;  %v71_v44 = vmin.f32 %v70_v42, 15.0 }
  0x36   :  { %761 = vmatmul.mubr.msk.f32.vlgmr.msra.gmra.mxu1 %vm150_vm0, %v753_v8 }
  0x37   :  { %582 = vmatprep.mubr.f32.mxu1 %v811_v0  ;;  %738 = vmatmul.mubr.msk.f32.gmra.mxu0 %vm150_vm0, %v143_v9  ;;  %v76_v46 = vrot.slane %v71_v44, %v849_v21  ;;  %v80_v47 = vrot.slane %v71_v44, %v851_v22 }
  0x38   :  { %251 = vmatprep.mubr.f32.mxu0 %v811_v0 }
  0x39   :  { %v86_v49 = vrot.slane %v76_v46, %v849_v21  ;;  %v90_v50 = vrot.slane %v80_v47, %v849_v21 }
  0x3a   :  { %762 = vmatmul.mubr.msk.f32.gmra.mxu1 %vm150_vm0, %v754_v10 }
  0x3b   :  { %588 = vmatprep.mubr.f32.mxu1 %v811_v0  ;;  %739 = vmatmul.mubr.msk.f32.gmra.mxu0 %vm150_vm0, %v144_v11  ;;  %v91_v52 = vsub.f32 %v853_v26, %v86_v49  ;;  %v93_v53 = vsub.f32 %v855_v27, %v86_v49  ;;  %v92_v55 = vsub.f32 %v853_v26, %v90_v50 }
  0x3c   :  { %257 = vmatprep.mubr.f32.mxu0 %v811_v0  ;;  %v94_v56 = vsub.f32 %v855_v27, %v90_v50 }
  0x3d   :  { %v95_v59 = vand.u32 2147483647, %v91_v52  ;;  %v96_v62 = vand.u32 2147483647, %v92_v55 }
  0x3e   :  { %763 = vmatmul.mubr.msk.f32.gmra.mxu1 %vm150_vm0, %v755_v12  ;;  %v98_v63 = vand.u32 2147483647, %v94_v56 }
  0x3f   :  { %594 = vmatprep.mubr.f32.mxu1 %v811_v0  ;;  %740 = vmatmul.mubr.msk.f32.gmra.mxu0 %vm150_vm0, %v145_v13  ;;  %v99_v4 = vsub.f32 1.0, %v95_v59  ;;  %v100_v7 = vsub.f32 1.0, %v96_v62 }
  0x40   :  { %263 = vmatprep.mubr.f32.mxu0 %v811_v0  ;;  %v102_v8 = vsub.f32 1.0, %v98_v63 }
  0x41   :  { %v971_v12 = vmax.f32 %v99_v4, 0.0 }
  0x42   :  { %764 = vmatmul.mubr.msk.f32.gmra.mxu1 %vm150_vm0, %v756_v14 }
  0x43   :  { %600 = vmatprep.mubr.f32.mxu1 %v811_v0  ;;  %741 = vmatmul.mubr.msk.f32.gmra.mxu0 %vm150_vm0, %v146_v15 }
  0x44   :  { %269 = vmatprep.mubr.f32.mxu0 %v811_v0 }
  0x46   :  { %765 = vmatmul.mubr.msk.f32.gmra.mxu1 %vm150_vm0, %v757_v16  ;;  %v975_v16 = vmax.f32 %v100_v7, 0.0 }
  0x47   :  { %606 = vmatprep.mubr.f32.mxu1 %v811_v0  ;;  %742 = vmatmul.mubr.msk.f32.gmra.mxu0 %vm150_vm0, %v147_v17  ;;  %v977_v17 = vmax.f32 %v102_v8, 0.0 }
  0x48   :  { %275 = vmatprep.mubr.f32.mxu0 %v811_v0 }
  0x4a   :  { %766 = vmatmul.mubr.msk.f32.gmra.mxu1 %vm150_vm0, %v758_v18 }
  0x4b   :  { %612 = vmatprep.mubr.f32.mxu1 %v811_v0  ;;  %743 = vmatmul.mubr.msk.f32.gmra.mxu0 %vm150_vm0, %v148_v19 }
  0x4c   :  { %281 = vmatprep.mubr.f32.mxu0 %v811_v0 }
  0x4e   :  { %767 = vmatmul.mubr.msk.f32.gmra.mxu1 %vm150_vm0, %v759_v20 }
  0x4f   :  { %618 = vmatprep.mubr.f32.mxu1 %v811_v0  ;;  %744 = vmatmul.mubr.msk.f32.gmra.mxu0 %vm150_vm0, %v149_v23  ;;  %v397_v0 = vmul.f32 %v396_v29, %v843_v1 }
  0x51   :  { %v752_v35 = vrot.slane %v397_v0, 9 }
  0x52   :  { %768 = vmatmul.mubr.msk.f32.gmra.mxu1 %vm150_vm0, %v760_v24 }
  0x53   :  { %v402_v38 = vadd.f32 %v752_v35, %v395_v34 }
  0x55   :  { %v404_v41 = vadd.f32 %v403_v40, %v402_v38 }
  0x57   :  { %v407_v43 = vmax.f32 %v404_v41, 0.0 }
  0x59   :  { %v408_v45 = vmin.f32 %v407_v43, 15.0 }
  0x5b   :  { %v413_v48 = vrot.slane %v408_v45, %v849_v21  ;;  %v417_v1 = vrot.slane %v408_v45, %v851_v22  ;;  %v97_v22 = vand.u32 2147483647, %v93_v53 }
  0x5d   :  { %v423_v51 = vrot.slane %v413_v48, %v849_v21  ;;  %v427_v54 = vrot.slane %v417_v1, %v849_v21  ;;  %v101_v21 = vsub.f32 1.0, %v97_v22 }
  0x5f   :  { %v428_v57 = vsub.f32 %v853_v26, %v423_v51  ;;  %v430_v58 = vsub.f32 %v855_v27, %v423_v51  ;;  %v429_v60 = vsub.f32 %v853_v26, %v427_v54  ;;  %v431_v61 = vsub.f32 %v855_v27, %v427_v54 }
  0x60   :  { %v973_v13 = vmax.f32 %v101_v21, 0.0 }
  0x61   :  { %v432_v2 = vand.u32 2147483647, %v428_v57  ;;  %v434_v3 = vand.u32 2147483647, %v430_v58  ;;  %v433_v5 = vand.u32 2147483647, %v429_v60 }
  0x62   :  { %v435_v6 = vand.u32 2147483647, %v431_v61 }
  0x63   :  { %v436_v10 = vsub.f32 1.0, %v432_v2  ;;  %v438_v11 = vsub.f32 1.0, %v434_v3  ;;  %v437_v14 = vsub.f32 1.0, %v433_v5 }
  0x64   :  { %v439_v27 = vsub.f32 1.0, %v435_v6 }
  0x65   :  { %v979_v18 = vmax.f32 %v436_v10, 0.0  ;;  %v981_v20 = vmax.f32 %v438_v11, 0.0  ;;  %v985_v28 = vmax.f32 %v437_v14, 0.0 }
  0x66   :  { %v987_v30 = vmax.f32 %v439_v27, 0.0 }
  0xf3   :  { %v241_v9 = vpop.f32.mrf.mxu0 }
  0xf4   :  { %v288_v23 = vmul.f32 %v241_v9, %v971_v12 }
  0xf5   :  { %v243_v26 = vpop.f32.mrf.mxu0 }
  0xf6   :  { %v578_v15 = vpop.f32.mrf.mxu1  ;;  %v289_v0 = vmul.f32 %v243_v26, %v975_v16 }
  0xf7   :  { %v247_v19 = vpop.f32.mrf.mxu0  ;;  %v625_v34 = vmul.f32 %v578_v15, %v979_v18 }
  0xf8   :  { %v580_v24 = vpop.f32.mrf.mxu1  ;;  %v290_v25 = vmul.f32 %v247_v19, %v973_v13 }
  0xf9   :  { %v249_v29 = vpop.f32.mrf.mxu0  ;;  %v626_v40 = vmul.f32 %v580_v24, %v985_v28 }
  0xfa   :  { %v292_v31 = vadd.f32 %v290_v25, %v288_v23  ;;  %v584_v32 = vpop.f32.mrf.mxu1  ;;  %v291_v33 = vmul.f32 %v249_v29, %v977_v17 }
  0xfb   :  { %v627_v35 = vmul.f32 %v584_v32, %v981_v20  ;;  %v253_v36 = vpop.f32.mrf.mxu0 }
  0xfc   :  { %v293_v37 = vrot.slane %v292_v31, 4  ;;  %v299_v38 = vadd.f32 %v291_v33, %v289_v0  ;;  %v586_v39 = vpop.f32.mrf.mxu1  ;;  %v306_v50 = vmul.f32 %v253_v36, %v971_v12 }
  0xfd   :  { %v629_v41 = vadd.f32 %v627_v35, %v625_v34  ;;  %v628_v42 = vmul.f32 %v586_v39, %v987_v30  ;;  %v255_v43 = vpop.f32.mrf.mxu0 }
  0xfe   :  { %v294_v44 = vadd.f32 %v293_v37, %v292_v31  ;;  %v300_v45 = vrot.slane %v299_v38, 4  ;;  %v590_v46 = vpop.f32.mrf.mxu1  ;;  %v307_v55 = vmul.f32 %v255_v43, %v975_v16 }
  0xff   :  { %v630_v47 = vrot.slane %v629_v41, 4  ;;  %v636_v48 = vadd.f32 %v628_v42, %v626_v40  ;;  %v259_v49 = vpop.f32.mrf.mxu0  ;;  %v643_v62 = vmul.f32 %v590_v46, %v979_v18 }
 0x100   :  { %v301_v1 = vadd.f32 %v300_v45, %v299_v38  ;;  %v592_v51 = vpop.f32.mrf.mxu1  ;;  %v308_v52 = vmul.f32 %v259_v49, %v973_v13  ;;  %v295_v53 = vrot.slane %v294_v44, 2 }
 0x101   :  { %v637_v54 = vrot.slane %v636_v48, 4  ;;  %v261_v56 = vpop.f32.mrf.mxu0  ;;  %v631_v57 = vadd.f32 %v630_v47, %v629_v41  ;;  %v644_v6 = vmul.f32 %v592_v51, %v985_v28 }
 0x102   :  { %v302_v58 = vrot.slane %v301_v1, 2  ;;  %v310_v59 = vadd.f32 %v308_v52, %v306_v50  ;;  %v596_v22 = vpop.f32.mrf.mxu1  ;;  %v309_v60 = vmul.f32 %v261_v56, %v977_v17  ;;  %v296_v5 = vadd.f32 %v295_v53, %v294_v44 }
 0x103   :  { %v638_v61 = vadd.f32 %v637_v54, %v636_v48  ;;  %v645_v63 = vmul.f32 %v596_v22, %v981_v20  ;;  %v265_v2 = vpop.f32.mrf.mxu0  ;;  %v632_v10 = vrot.slane %v631_v57, 2 }
 0x104   :  { %v311_v3 = vrot.slane %v310_v59, 4  ;;  %v317_v4 = vadd.f32 %v309_v60, %v307_v55  ;;  %v598_v21 = vpop.f32.mrf.mxu1  ;;  %v303_v11 = vadd.f32 %v302_v58, %v301_v1  ;;  %v297_v32 = vrot.slane %v296_v5, 1 }
 0x105   :  { %v647_v7 = vadd.f32 %v645_v63, %v643_v62  ;;  %v646_v8 = vmul.f32 %v598_v21, %v987_v30  ;;  %v267_v9 = vpop.f32.mrf.mxu0  ;;  %v639_v26 = vrot.slane %v638_v61, 2  ;;  %v1003_v33 = vadd.f32 %v632_v10, %v631_v57 }
 0x106   :  { %v318_v14 = vrot.slane %v317_v4, 4  ;;  %v602_v27 = vpop.f32.mrf.mxu1  ;;  %v312_v15 = vadd.f32 %v311_v3, %v310_v59  ;;  %v304_v34 = vrot.slane %v303_v11, 1  ;;  %v324_v40 = vmul.f32 %v265_v2, %v971_v12 }
 0x107   :  { %v648_v19 = vrot.slane %v647_v7, 4  ;;  %v654_v23 = vadd.f32 %v646_v8, %v644_v6  ;;  %v271_v24 = vpop.f32.mrf.mxu0  ;;  %v1005_v35 = vadd.f32 %v639_v26, %v638_v61  ;;  %v661_v42 = vmul.f32 %v602_v27, %v979_v18 }
 0x108   :  { %v319_v25 = vadd.f32 %v318_v14, %v317_v4  ;;  %v604_v29 = vpop.f32.mrf.mxu1  ;;  %v313_v37 = vrot.slane %v312_v15, 2  ;;  %v325_v43 = vmul.f32 %v267_v9, %v975_v16  ;;  %v326_v44 = vmul.f32 %v271_v24, %v973_v13 }
 0x109   :  { %v655_v0 = vrot.slane %v654_v23, 4  ;;  %v273_v31 = vpop.f32.mrf.mxu0  ;;  %v649_v38 = vadd.f32 %v648_v19, %v647_v7  ;;  %v662_v48 = vmul.f32 %v604_v29, %v985_v28  ;;  %v1015_v51 = vadd.f32 %v297_v32, %v296_v5 }
 0x10a   :  { %v608_v36 = vpop.f32.mrf.mxu1  ;;  %v320_v39 = vrot.slane %v319_v25, 2  ;;  %v327_v49 = vmul.f32 %v273_v31, %v977_v17  ;;  %v634_v52 = vrot.slane %v1003_v33, 1  ;;  %v328_v53 = vadd.f32 %v326_v44, %v324_v40 }
 0x10b   :  { %v277_v41 = vpop.f32.mrf.mxu0  ;;  %v663_v45 = vmul.f32 %v608_v36, %v981_v20  ;;  %v656_v47 = vadd.f32 %v655_v0, %v654_v23  ;;  %v1018_v56 = vadd.f32 %v304_v34, %v303_v11  ;;  %v641_v57 = vrot.slane %v1005_v35, 1 }
 0x10c   :  { %v610_v46 = vpop.f32.mrf.mxu1  ;;  %v335_v58 = vadd.f32 %v327_v49, %v325_v43  ;;  %v314_v60 = vadd.f32 %v313_v37, %v312_v15  ;;  %v650_v61 = vrot.slane %v649_v38, 2  ;;  %v329_v62 = vrot.slane %v328_v53, 4 }
 0x10d   :  { %v664_v1 = vmul.f32 %v610_v46, %v987_v30  ;;  %v279_v50 = vpop.f32.mrf.mxu0  ;;  %v665_v54 = vadd.f32 %v663_v45, %v661_v42  ;;  %v321_v3 = vadd.f32 %v320_v39, %v319_v25  ;;  %v657_v4 = vrot.slane %v656_v47, 2 }
 0x10e   :  { %v614_v55 = vpop.f32.mrf.mxu1  ;;  %v336_v21 = vrot.slane %v335_v58, 4  ;;  %v330_v6 = vadd.f32 %v329_v62, %v328_v53  ;;  %v342_v8 = vmul.f32 %v277_v41, %v971_v12  ;;  %v343_v27 = vmul.f32 %v279_v50, %v975_v16 }
 0x10f   :  { %v672_v59 = vadd.f32 %v664_v1, %v662_v48  ;;  %v283_v22 = vpop.f32.mrf.mxu0  ;;  %v666_v63 = vrot.slane %v665_v54, 4  ;;  %v679_v9 = vmul.f32 %v614_v55, %v979_v18  ;;  %v651_v32 = vadd.f32 %v650_v61, %v649_v38 }
 0x110   :  { %v616_v2 = vpop.f32.mrf.mxu1  ;;  %v337_v26 = vadd.f32 %v336_v21, %v335_v58  ;;  %v331_v19 = vrot.slane %v330_v6, 2  ;;  %v344_v24 = vmul.f32 %v283_v22, %v973_v13  ;;  %v658_v34 = vadd.f32 %v657_v4, %v656_v47 }
 0x111   :  { %v673_v5 = vrot.slane %v672_v59, 4  ;;  %v667_v7 = vadd.f32 %v666_v63, %v665_v54  ;;  %v285_v11 = vpop.f32.mrf.mxu0  ;;  %v680_v15 = vmul.f32 %v616_v2, %v985_v28  ;;  %v315_v43 = vrot.slane %v314_v60, 1 }
 0x112   :  { %v620_v10 = vpop.f32.mrf.mxu1  ;;  %v338_v0 = vrot.slane %v337_v26, 2  ;;  %v345_v12 = vmul.f32 %v285_v11, %v977_v17  ;;  %v346_v36 = vadd.f32 %v344_v24, %v342_v8  ;;  %v332_v16 = vadd.f32 %v331_v19, %v330_v6 }
 0x113   :  { %v674_v14 = vadd.f32 %v673_v5, %v672_v59  ;;  %v668_v23 = vrot.slane %v667_v7, 2  ;;  %v681_v25 = vmul.f32 %v620_v10, %v981_v20  ;;  %v322_v44 = vrot.slane %v321_v3, 1 }
 0x114   :  { %v622_v29 = vpop.f32.mrf.mxu1  ;;  %v353_v28 = vadd.f32 %v345_v12, %v343_v27  ;;  %v339_v41 = vadd.f32 %v338_v0, %v337_v26  ;;  %v347_v42 = vrot.slane %v346_v36, 4  ;;  %v652_v17 = vrot.slane %v651_v32, 1 }
 0x115   :  { %v675_v31 = vrot.slane %v674_v14, 2  ;;  %v682_v18 = vmul.f32 %v622_v29, %v987_v30  ;;  %v683_v37 = vadd.f32 %v681_v25, %v679_v9  ;;  %v669_v39 = vadd.f32 %v668_v23, %v667_v7 }
 0x116   :  { %v354_v45 = vrot.slane %v353_v28, 4  ;;  %v659_v30 = vrot.slane %v658_v34, 1  ;;  %v348_v38 = vadd.f32 %v347_v42, %v346_v36  ;;  %v333_v48 = vrot.slane %v332_v16, 1 }
 0x117   :  { %v690_v40 = vadd.f32 %v682_v18, %v680_v15  ;;  %v676_v13 = vadd.f32 %v675_v31, %v674_v14  ;;  %v684_v20 = vrot.slane %v683_v37, 4  ;;  %v670_v49 = vrot.slane %v669_v39, 1 }
 0x118   :  { %v355_v1 = vadd.f32 %v354_v45, %v353_v28  ;;  %v340_v53 = vrot.slane %v339_v41, 1  ;;  %v349_v55 = vrot.slane %v348_v38, 2  ;;  %v316_v59 = vadd.f32 %v315_v43, %v314_v60 }
 0x119   :  { %v691_v46 = vrot.slane %v690_v40, 4  ;;  %v685_v47 = vadd.f32 %v684_v20, %v683_v37  ;;  %v677_v54 = vrot.slane %v676_v13, 1  ;;  %v323_v22 = vadd.f32 %v322_v44, %v321_v3 }
 0x11a   :  { %v356_v61 = vrot.slane %v355_v1, 2  ;;  %v653_v63 = vadd.f32 %v652_v17, %v651_v32  ;;  %v660_v2 = vadd.f32 %v659_v30, %v658_v34  ;;  %v350_v4 = vadd.f32 %v349_v55, %v348_v38 }
 0x11b   :  { %v692_v50 = vadd.f32 %v691_v46, %v690_v40  ;;  %v686_v58 = vrot.slane %v685_v47, 2  ;;  %v334_v5 = vadd.f32 %v333_v48, %v332_v16  ;;  %v671_v6 = vadd.f32 %v670_v49, %v669_v39 }
 0x11c   :  { %v357_v7 = vadd.f32 %v356_v61, %v355_v1  ;;  %v341_v9 = vadd.f32 %v340_v53, %v339_v41  ;;  %v678_v10 = vadd.f32 %v677_v54, %v676_v13  ;;  %v351_v11 = vrot.slane %v350_v4, 1 }
 0x11d   :  { %v693_v62 = vrot.slane %v692_v50, 2  ;;  %v687_v21 = vadd.f32 %v686_v58, %v685_v47  ;;  %v635_v14 = vadd.f32 %v634_v52, %v1003_v33  ;;  %v642_v60 = vadd.f32 %v641_v57, %v1005_v35 }
 0x11e   :  { %v358_v3 = vrot.slane %v357_v7, 1  ;;  %v352_v15 = vadd.f32 %v351_v11, %v350_v4  ;;  %v361_v23 = vsel %vm360_vm1, %v1015_v51, %v316_v59  ;;  %v362_v24 = vsel %vm360_vm1, %v1018_v56, %v323_v22 }
 0x11f   :  { %v694_v8 = vadd.f32 %v693_v62, %v692_v50  ;;  %v688_v26 = vrot.slane %v687_v21, 1  ;;  %v697_v0 = vsel %vm360_vm1, %v635_v14, %v653_v63  ;;  %v698_v33 = vsel %vm360_vm1, %v642_v60, %v660_v2 }
 0x120   :  { %v359_v25 = vadd.f32 %v358_v3, %v357_v7  ;;  %v364_v35 = vsel %vm363_vm2, %v361_v23, %v334_v5  ;;  %v365_v52 = vsel %vm363_vm2, %v362_v24, %v341_v9  ;;  %v699_v57 = vsel %vm363_vm2, %v697_v0, %v671_v6 }
 0x121   :  { %v695_v27 = vrot.slane %v694_v8, 1  ;;  %v689_v19 = vadd.f32 %v688_v26, %v687_v21  ;;  %v700_v31 = vsel %vm363_vm2, %v698_v33, %v678_v10  ;;  %v367_v51 = vsel %vm366_vm3, %v364_v35, %v352_v15 }
 0x122   :  { %v368_v56 = vsel %vm366_vm3, %v365_v52, %v359_v25 }
 0x123   :  { %v696_v29 = vadd.f32 %v695_v27, %v694_v8  ;;  %v701_v12 = vsel %vm366_vm3, %v699_v57, %v689_v19  ;;  %v707_v32 = vcombine.low %v367_v51, %v368_v56 }
 0x125   :  { %v702_v18 = vsel %vm366_vm3, %v700_v31, %v696_v29  ;;  %711 = vst [vmem:[#allocation5] sm:$0xff] %v707_v32 }
 0x126   :  { %v708_v34 = vcombine.low %v701_v12, %v702_v18 }
 0x128   :  { %712 = vst [vmem:[#allocation5 + $0x8] sm:$0xff] %v708_v34 }
 0x129   :  { %797 = shalt.err (!%p794_p9)
}
 0x12a   :  { %s813_s7 = smov 128   ;;  %s814_s8 = smov 8  }
 0x12b   :  { %724 = dma.vmem_to_hbm [thread:$0]  %s719_s5, 256, %s1055_s3, [#allocation3], %s813_s7, %s813_s7, %s814_s8  }
 0x12c   :  { %808 = dma.done.wait [#allocation3], 256  }
 0x12d   :  { %809 = vsyncadd [#allocation3], 4294967040 }
 0x12e   :  { %728 = vsyncpa [#allocation3], 1 }
 0x12f   :  { %729 = vsyncpa [#allocation4], 1 }

</bundles_post_ra>
